<compile_context>
chip_gen: v7x
topology: tpu7x:2x2x1
jax: 0.10.0
libtpu: 0.0.40
codegen_flags: <defaults>
</compile_context>

<pallas_src>
import functools

import numpy as np
import jax
import jax.numpy as jnp
from jax.experimental import pallas as pl
from jax.experimental.pallas import tpu as pltpu

KH = KW = 5
STRIDE = 2
PAD = 2

# ---------------------------------------------------------------------------
# Generation-aware VMEM limit (queried once; conservative v7x-sized fallback).
try:
    _VMEM_CAP = int(pltpu.get_tpu_info().vmem_capacity_bytes)
except Exception:  # pragma: no cover - conservative fallback if query fails
    _VMEM_CAP = 64 * 1024 * 1024
_VMEM_LIMIT = (48 if _VMEM_CAP <= 64 * 1024 * 1024 else 96) * 1024 * 1024


def _padded_vmem_bytes(shape, dtype):
    """Bytes a buffer really occupies in VMEM, accounting for (sublane,lane) tiling."""
    itemsize = jnp.dtype(dtype).itemsize
    if len(shape) == 1:
        lead, s, l = 1, 1, shape[0]
    else:
        lead = int(np.prod(shape[:-2], dtype=np.int64)) if len(shape) > 2 else 1
        s, l = shape[-2], shape[-1]
    sub = 8 * (4 // itemsize)  # 8 rows for 32-bit, 16 for bf16, 32 for int8
    s_pad = -(-s // sub) * sub
    l_pad = -(-l // 128) * 128
    return lead * s_pad * l_pad * itemsize


def _make_conv_kernel(Nb, Ho, Wo, flatten_out):
    HoWo = Ho * Wo

    def kernel(xs_ref, w_ref, b_ref, o_ref):
        # xs_ref: (Nb, Hs, Ws, 4C)    parity-split circular-padded images
        # w_ref : (9*4C, Cout)        im2col weight matrix (tap-major rows)
        # b_ref : (1, Cout)           f32 bias
        # o_ref : (Nb, 1, Cout*HoWo)  if flatten_out else (Nb, Cout, HoWo)
        c4 = xs_ref.shape[-1]
        cout = b_ref.shape[-1]
        rows = Nb * HoWo

        # In-VMEM im2col: 9 shifted views -> one (rows, 9*4C) slab, single MXU dot.
        # (The reshape is layout-free when Wo % 8 == 0; otherwise a small VMEM
        #  relayout -- perf only, never correctness.)
        slabs = []
        for a in range(3):
            for b in range(3):
                v = xs_ref[:, pl.ds(a, Ho), pl.ds(b, Wo), :]       # (Nb, Ho, Wo, 4C)
                slabs.append(v.reshape(rows, c4))
        patch = jnp.concatenate(slabs, axis=-1)                    # (rows, 9*4C)

        acc = jnp.dot(patch, w_ref[...], preferred_element_type=jnp.float32)
        acc = jnp.maximum(acc + b_ref[...].astype(jnp.float32), 0.0)   # (rows, Cout) f32

        out = jnp.swapaxes(acc.reshape(Nb, HoWo, cout), 1, 2)      # (Nb, Cout, HoWo)
        if flatten_out:
            o_ref[...] = out.reshape(Nb, 1, cout * HoWo).astype(o_ref.dtype)
        else:
            o_ref[...] = out.astype(o_ref.dtype)

    return kernel


@functools.partial(jax.jit, static_argnames=("compute_dtype",))
def downsample_block(x, weight, bias, *, compute_dtype=jnp.float32):
    """x: (N, C, H, W); weight: (Cout, C, 5, 5); bias: (Cout,) -> (N, Cout, H//2, W//2)."""
    N, C, H, W = x.shape
    Cout = weight.shape[0]
    assert H % 2 == 0 and W % 2 == 0, "stride-2 downsample expects even spatial dims"
    Ho, Wo = H // STRIDE, W // STRIDE
    Hs, Ws = Ho + 2, Wo + 2            # (H + 2*PAD) // 2
    C4 = 4 * C
    HoWo = Ho * Wo
    flatten_out = HoWo < 128           # lane-dense (>=128-lane) store for small outputs

    # ---- wrapper-side layout plumbing, all O(input) sized --------------------
    # circular pad + space-to-depth (pad/reshape/transpose fuse into one copy
    # fusion under jit; the kernel then reads the activation exactly once).
    xc = x.astype(compute_dtype)
    xp = jnp.pad(xc, ((0, 0), (0, 0), (PAD, PAD), (PAD, PAD)), mode="wrap")
    # xs[n, i, j, (2p+q)*C + c] = xp[n, c, 2i+p, 2j+q]
    xs = (xp.reshape(N, C, Hs, 2, Ws, 2)
            .transpose(0, 2, 4, 3, 5, 1)
            .reshape(N, Hs, Ws, C4))

    # im2col weights: w9[(3a+b)*4C + (2p+q)*C + c, co] = weight[co, c, 2a+p, 2b+q]
    # (the kh=5 / kw=5 taps are zero-padded away)
    wpad = jnp.pad(weight, ((0, 0), (0, 0), (0, 1), (0, 1)))        # (Cout, C, 6, 6)
    w9 = (wpad.reshape(Cout, C, 3, 2, 3, 2)
              .transpose(2, 4, 3, 5, 1, 0)
              .reshape(9 * C4, Cout)).astype(compute_dtype)

    b2 = bias.reshape(1, Cout).astype(jnp.float32)                  # bias/ReLU stay f32

    # ---- tile-padding-aware per-step VMEM budget; pick the image batch Nb -----
    out_block = (lambda nb: (nb, 1, Cout * HoWo)) if flatten_out else \
                (lambda nb: (nb, Cout, HoWo))

    def per_step_bytes(nb):
        rows = nb * HoWo
        return (2 * _padded_vmem_bytes((nb, Hs, Ws, C4), compute_dtype)   # dbl-buffered input
                + 2 * _padded_vmem_bytes((9 * C4, Cout), compute_dtype)   # weights (2x buffers)
                + 2 * _padded_vmem_bytes((1, Cout), jnp.float32)          # bias
                + 2 * _padded_vmem_bytes(out_block(nb), jnp.float32)      # dbl-buffered output
                + _padded_vmem_bytes((rows, 9 * C4), compute_dtype)       # im2col slab
                + 2 * _padded_vmem_bytes((rows, Cout), jnp.float32))      # acc + transpose tmp

    # Batch images per step to amortize ~0.35us/step overhead and fill MXU rows,
    # but keep >= 2 grid steps so both v7x TensorCores get work.
    nb_cap = max(1, min(8, N // 2)) if N >= 2 else 1
    Nb = 1
    for nb in range(1, nb_cap + 1):
        if N % nb == 0 and per_step_bytes(nb) <= int(0.75 * _VMEM_LIMIT):
            Nb = nb
    assert per_step_bytes(Nb) <= _VMEM_LIMIT, (
        "per-step VMEM block too large even at Nb=1; tile the output spatially")
    # TODO(synk): add Ho-tiling for inputs too large to fit one image block in VMEM.

    if flatten_out:
        out_shape = jax.ShapeDtypeStruct((N, 1, Cout * HoWo), jnp.float32)
        out_spec = pl.BlockSpec((Nb, 1, Cout * HoWo), lambda n: (n, 0, 0))
    else:
        out_shape = jax.ShapeDtypeStruct((N, Cout, HoWo), jnp.float32)
        out_spec = pl.BlockSpec((Nb, Cout, HoWo), lambda n: (n, 0, 0))

    kernel = _make_conv_kernel(Nb, Ho, Wo, flatten_out)
    out_flat = pl.pallas_call(
        kernel,
        out_shape=out_shape,
        grid_spec=pltpu.PrefetchScalarGridSpec(
            num_scalar_prefetch=0,
            grid=(N // Nb,),
            in_specs=[
                pl.BlockSpec((Nb, Hs, Ws, C4), lambda n: (n, 0, 0, 0)),
                pl.BlockSpec((9 * C4, Cout), lambda n: (0, 0)),
                pl.BlockSpec((1, Cout), lambda n: (0, 0)),
            ],
            out_specs=out_spec,
        ),
        compiler_params=pltpu.CompilerParams(
            dimension_semantics=("parallel",),      # shard image-batches across TCs
            vmem_limit_bytes=_VMEM_LIMIT,
        ),
    )(xs, w9, b2)

    # free row-major reshape -- no transpose pass over the output
    return out_flat.reshape(N, Cout, Ho, Wo)


def _reference(x, weight, bias):
    xp = jnp.pad(x, ((0, 0), (0, 0), (PAD, PAD), (PAD, PAD)), mode="wrap")
    y = jax.lax.conv_general_dilated(
        xp, weight, window_strides=(STRIDE, STRIDE), padding="VALID",
        dimension_numbers=("NCHW", "OIHW", "NCHW"))
    return jnp.maximum(y + bias.reshape(1, -1, 1, 1), 0.0)


if __name__ == "__main__":
    key = jax.random.PRNGKey(0)
    k_x, k_w, k_b = jax.random.split(key, 3)

    N, C, H, W = 2, 4, 16, 16
    x = jax.random.normal(k_x, (N, C, H, W), dtype=jnp.float32)

    # layer_init: orthogonal weight with gain sqrt(2), zero bias
    w_flat = jax.nn.initializers.orthogonal(scale=float(np.sqrt(2)))(
        k_w, (C, C * KH * KW), jnp.float32)
    weight = w_flat.reshape(C, C, KH, KW)
    bias = jnp.zeros((C,), dtype=jnp.float32)

    # f32 path: exact match against the XLA conv reference
    y = jax.block_until_ready(downsample_block(x, weight, bias))
    y_ref = _reference(x, weight, bias)
    assert y.shape == (N, C, H // 2, W // 2), y.shape
    np.testing.assert_allclose(np.asarray(y), np.asarray(y_ref), rtol=1e-5, atol=1e-5)

    # non-zero bias exercises the bias path
    bias2 = jax.random.normal(k_b, (C,), dtype=jnp.float32)
    y2 = jax.block_until_ready(downsample_block(x, weight, bias2))
    np.testing.assert_allclose(np.asarray(y2), np.asarray(_reference(x, weight, bias2)),
                               rtol=1e-5, atol=1e-5)

    # bf16 MXU-input path (recommended on v6e/v7x); relaxed tolerance vs f32 ref
    y3 = jax.block_until_ready(downsample_block(x, weight, bias2,
                                                compute_dtype=jnp.bfloat16))
    np.testing.assert_allclose(np.asarray(y3), np.asarray(_reference(x, weight, bias2)),
                               rtol=5e-2, atol=5e-2)

    print("KERNEL_OK")
</pallas_src>

<mosaic_0001>
module attributes {stable_mosaic.version = 11 : i64} {
  func.func @kernel(%arg0: i32, %arg1: memref<1x10x10x16xf32, #tpu.memory_space<vmem>>, %arg2: memref<144x4xf32, #tpu.memory_space<vmem>>, %arg3: memref<1x4xf32, #tpu.memory_space<vmem>>, %arg4: memref<1x1x256xf32, #tpu.memory_space<vmem>>) attributes {dimension_semantics = [#tpu.dimension_semantics<parallel>], iteration_bounds = array<i64: 2>, scalar_prefetch = 0 : i64, scratch_operands = 0 : i64, tpu.core_type = #tpu.core_type<tc>, window_params = [{transform_indices = @transform_0, window_bounds = array<i64: 1, 10, 10, 16>}, {pipeline_mode = #tpu.pipeline_mode<synchronous>, transform_indices = @transform_1, window_bounds = array<i64: 144, 4>}, {pipeline_mode = #tpu.pipeline_mode<synchronous>, transform_indices = @transform_2, window_bounds = array<i64: 1, 4>}, {transform_indices = @transform_3, window_bounds = array<i64: 1, 1, 256>}]} {
    %c0 = arith.constant 0 : index
    %c0_0 = arith.constant 0 : index
    %c0_1 = arith.constant 0 : index
    %c0_2 = arith.constant 0 : index
    %0 = vector.load %arg1[%c0, %c0_0, %c0_1, %c0_2] : memref<1x10x10x16xf32, #tpu.memory_space<vmem>>, vector<1x8x8x16xf32>
    %1 = vector.shape_cast %0 : vector<1x8x8x16xf32> to vector<64x16xf32>
    %c0_3 = arith.constant 0 : index
    %c0_4 = arith.constant 0 : index
    %c1 = arith.constant 1 : index
    %c0_5 = arith.constant 0 : index
    %2 = vector.load %arg1[%c0_3, %c0_4, %c1, %c0_5] : memref<1x10x10x16xf32, #tpu.memory_space<vmem>>, vector<1x8x8x16xf32>
    %3 = vector.shape_cast %2 : vector<1x8x8x16xf32> to vector<64x16xf32>
    %c0_6 = arith.constant 0 : index
    %c0_7 = arith.constant 0 : index
    %c2 = arith.constant 2 : index
    %c0_8 = arith.constant 0 : index
    %4 = vector.load %arg1[%c0_6, %c0_7, %c2, %c0_8] : memref<1x10x10x16xf32, #tpu.memory_space<vmem>>, vector<1x8x8x16xf32>
    %5 = vector.shape_cast %4 : vector<1x8x8x16xf32> to vector<64x16xf32>
    %c0_9 = arith.constant 0 : index
    %c1_10 = arith.constant 1 : index
    %c0_11 = arith.constant 0 : index
    %c0_12 = arith.constant 0 : index
    %6 = vector.load %arg1[%c0_9, %c1_10, %c0_11, %c0_12] : memref<1x10x10x16xf32, #tpu.memory_space<vmem>>, vector<1x8x8x16xf32>
    %7 = vector.shape_cast %6 : vector<1x8x8x16xf32> to vector<64x16xf32>
    %c0_13 = arith.constant 0 : index
    %c1_14 = arith.constant 1 : index
    %c1_15 = arith.constant 1 : index
    %c0_16 = arith.constant 0 : index
    %8 = vector.load %arg1[%c0_13, %c1_14, %c1_15, %c0_16] : memref<1x10x10x16xf32, #tpu.memory_space<vmem>>, vector<1x8x8x16xf32>
    %9 = vector.shape_cast %8 : vector<1x8x8x16xf32> to vector<64x16xf32>
    %c0_17 = arith.constant 0 : index
    %c1_18 = arith.constant 1 : index
    %c2_19 = arith.constant 2 : index
    %c0_20 = arith.constant 0 : index
    %10 = vector.load %arg1[%c0_17, %c1_18, %c2_19, %c0_20] : memref<1x10x10x16xf32, #tpu.memory_space<vmem>>, vector<1x8x8x16xf32>
    %11 = vector.shape_cast %10 : vector<1x8x8x16xf32> to vector<64x16xf32>
    %c0_21 = arith.constant 0 : index
    %c2_22 = arith.constant 2 : index
    %c0_23 = arith.constant 0 : index
    %c0_24 = arith.constant 0 : index
    %12 = vector.load %arg1[%c0_21, %c2_22, %c0_23, %c0_24] : memref<1x10x10x16xf32, #tpu.memory_space<vmem>>, vector<1x8x8x16xf32>
    %13 = vector.shape_cast %12 : vector<1x8x8x16xf32> to vector<64x16xf32>
    %c0_25 = arith.constant 0 : index
    %c2_26 = arith.constant 2 : index
    %c1_27 = arith.constant 1 : index
    %c0_28 = arith.constant 0 : index
    %14 = vector.load %arg1[%c0_25, %c2_26, %c1_27, %c0_28] : memref<1x10x10x16xf32, #tpu.memory_space<vmem>>, vector<1x8x8x16xf32>
    %15 = vector.shape_cast %14 : vector<1x8x8x16xf32> to vector<64x16xf32>
    %c0_29 = arith.constant 0 : index
    %c2_30 = arith.constant 2 : index
    %c2_31 = arith.constant 2 : index
    %c0_32 = arith.constant 0 : index
    %16 = vector.load %arg1[%c0_29, %c2_30, %c2_31, %c0_32] : memref<1x10x10x16xf32, #tpu.memory_space<vmem>>, vector<1x8x8x16xf32>
    %17 = vector.shape_cast %16 : vector<1x8x8x16xf32> to vector<64x16xf32>
    %18 = tpu.concatenate %1, %3, %5, %7, %9, %11, %13, %15, %17 in 1 : vector<64x16xf32>, vector<64x16xf32>, vector<64x16xf32>, vector<64x16xf32>, vector<64x16xf32>, vector<64x16xf32>, vector<64x16xf32>, vector<64x16xf32>, vector<64x16xf32> -> vector<64x144xf32>
    %c0_33 = arith.constant 0 : index
    %c0_34 = arith.constant 0 : index
    %19 = vector.load %arg2[%c0_33, %c0_34] : memref<144x4xf32, #tpu.memory_space<vmem>>, vector<144x4xf32>
    %cst = arith.constant dense<0.000000e+00> : vector<64x4xf32>
    %20 = tpu.matmul %18, %19, %cst {dimension_numbers = #tpu.dot_dimension_numbers<[1], [0], [0], [1], [0, 0, 1, 1], [], []>} : vector<64x144xf32>, vector<144x4xf32>, vector<64x4xf32> -> vector<64x4xf32>
    %c0_35 = arith.constant 0 : index
    %c0_36 = arith.constant 0 : index
    %21 = vector.load %arg3[%c0_35, %c0_36] : memref<1x4xf32, #tpu.memory_space<vmem>>, vector<1x4xf32>
    %22 = vector.broadcast %21 : vector<1x4xf32> to vector<64x4xf32>
    %23 = arith.addf %20, %22 : vector<64x4xf32>
    %cst_37 = arith.constant 0.000000e+00 : f32
    %24 = vector.broadcast %cst_37 : f32 to vector<64x4xf32>
    %25 = arith.maximumf %23, %24 : vector<64x4xf32>
    %26 = vector.shape_cast %25 : vector<64x4xf32> to vector<1x64x4xf32>
    %27 = tpu.transpose %26, [0, 2, 1] : vector<1x64x4xf32> -> vector<1x4x64xf32>
    %28 = vector.shape_cast %27 : vector<1x4x64xf32> to vector<1x1x256xf32>
    %c0_38 = arith.constant 0 : index
    %c0_39 = arith.constant 0 : index
    %c0_40 = arith.constant 0 : index
    %29 = vector.load %arg4[%c0_38, %c0_39, %c0_40] : memref<1x1x256xf32, #tpu.memory_space<vmem>>, vector<1x1x256xf32>
    tpu.vector_store %arg4[%c0_38, %c0_39, %c0_40], %28 {strides = array<i32>} : memref<1x1x256xf32, #tpu.memory_space<vmem>>, vector<1x1x256xf32>,
    return
  }
  func.func @transform_0(%arg0: i32) -> (i32, i32, i32, i32) {
    %c0_i32 = arith.constant 0 : i32
    %c0_i32_0 = arith.constant 0 : i32
    %c0_i32_1 = arith.constant 0 : i32
    %c0_i32_2 = arith.constant 0 : i32
    return %arg0, %c0_i32, %c0_i32_0, %c0_i32_1 : i32, i32, i32, i32
  }
  func.func @transform_1(%arg0: i32) -> (i32, i32) {
    %c0_i32 = arith.constant 0 : i32
    %c0_i32_0 = arith.constant 0 : i32
    %c0_i32_1 = arith.constant 0 : i32
    return %c0_i32, %c0_i32_0 : i32, i32
  }
  func.func @transform_2(%arg0: i32) -> (i32, i32) {
    %c0_i32 = arith.constant 0 : i32
    %c0_i32_0 = arith.constant 0 : i32
    %c0_i32_1 = arith.constant 0 : i32
    return %c0_i32, %c0_i32_0 : i32, i32
  }
  func.func @transform_3(%arg0: i32) -> (i32, i32, i32) {
    %c0_i32 = arith.constant 0 : i32
    %c0_i32_0 = arith.constant 0 : i32
    %c0_i32_1 = arith.constant 0 : i32
    return %arg0, %c0_i32, %c0_i32_0 : i32, i32, i32
  }
}

</mosaic_0001>

<bundles_post_ra>
// kernel: downsample_block.1
= control target key start
LH: loop header
LB: loop body
LE: loop exit
PB: predicated region body
PF: predicated region fallthrough
CT: control target
= control target key end

     0   :  { %s1131_s12 = smov 0   ;;  %s1426_s0 = inlined_call_operand.vmem [shape: f32[2,10,10,16], index: 0, kind: input, shape index: {}]   ;;  %s1427_s1 = inlined_call_operand.vmem [shape: f32[144,4], index: 1, kind: input, shape index: {}]   ;;  %s1428_s2 = inlined_call_operand.vmem [shape: f32[1,4], index: 2, kind: input, shape index: {}]   ;;  %s1429_s3 = inlined_call_operand.vmem [shape: f32[2,1,256], index: 3, kind: output, shape index: {}]  }
   0x1 LB: > { %s834_s13 = sadd.s32 4294967295, %s1097_s12   ;;  %p838_p0 = scmp.ge.s32.totalorder %s1097_s12, 1  ;;  %s1097_s12 = sphi %s1131_s12, %s13_s12  }
   0x2   : > { %p137_p1 = scmp.lt.s32.totalorder %s1097_s12, 3 }
   0x4   : > { %p138_p2 = pnand %p838_p0, %p137_p1 }
   0x5   : > { %p160_p3 = scmp.lt.s32.totalorder (!%p138_p2), %s834_s13, 1  ;;  %v530_v0 = vld [vmem:[%s1427_s1] sm:$0xff] (!%p138_p2)  ;;  %v531_v1 = vld [vmem:[%s1427_s1 + $0x8] sm:$0xff] (!%p138_p2)  ;;  %v532_v2 = vld [vmem:[%s1427_s1 + $0x10] sm:$0xff] (!%p138_p2)  ;;  %v1099_v3 = vmov (!%p138_p2), 0.0|0.0   ;;  %vm467_vm0 = vcmask (!%p138_p2), 130048  }
   0x6   : > { %141 = sbr.rel (%p138_p2) target bundleno = 648 (0x288), region = 32  ;;  %900 = vmatprep.subr.bf16.mxu0 (!%p138_p2), %v1099_v3  ;;  %v901_v4 = vpack.c.bf16 (!%p138_p2), %v531_v1, %v530_v0  ;;  %v533_v5 = vld [vmem:[%s1427_s1 + $0x18] sm:$0xff] (!%p138_p2)  ;;  %927 = vmatprep.subr.bf16.mxu1 (!%p138_p2), %v1099_v3  ;;  %v534_v7 = vld [vmem:[%s1427_s1 + $0x20] sm:$0xff] (!%p138_p2)  ;;  %v535_v8 = vld [vmem:[%s1427_s1 + $0x28] sm:$0xff] (!%p138_p2)  ;;  %s1100_s7 = smov (!%p138_p2), 48   ;;  %vm476_vm1 = vcmask (!%p138_p2), 261120  }
   0x7   : > { %v904_v6 = vpack.c.bf16 (!%p138_p2), %v533_v5, %v532_v2  ;;  %v536_v9 = vld [vmem:[%s1427_s1 + $0x30] sm:$0xff] (!%p138_p2)  ;;  %v537_v10 = vld [vmem:[%s1427_s1 + $0x38] sm:$0xff] (!%p138_p2)  ;;  %v907_v14 = vpack.c.bf16 (!%p138_p2), %v535_v8, %v534_v7  ;;  %s1101_s8 = smov (!%p138_p2), 16   ;;  %v538_v26 = vld [vmem:[%s1427_s1 + $0x40] sm:$0xff] (!%p138_p2)  ;;  %s1102_s15 = smov (!%p138_p2), 64   ;;  %vm485_vm2 = vcmask (!%p138_p2), 392192  }
   0x8   : > { %902 = vmatpush1.bf16.msra.mxu0 (!%p138_p2), %v901_v4  ;;  %936 = vmatpush1.bf16.msra.mxu1 (!%p138_p2), %v901_v4  ;;  %v910_v25 = vpack.c.bf16 (!%p138_p2), %v537_v10, %v536_v9  ;;  %v539_v27 = vld [vmem:[%s1427_s1 + $0x48] sm:$0xff] (!%p138_p2)  ;;  %s1103_s16 = smov (!%p138_p2), 32   ;;  %v540_v32 = vld [vmem:[%s1427_s1 + $0x50] sm:$0xff] (!%p138_p2)  ;;  %v541_v35 = vld [vmem:[%s1427_s1 + $0x58] sm:$0xff] (!%p138_p2)  ;;  %s1104_s21 = smov (!%p138_p2), 96   ;;  %vm494_vm3 = vcmask (!%p138_p2), 523264  }
   0x9   : > { %903 = vmatprep.subr.bf16.mxu0 (!%p138_p2), %v1099_v3  ;;  %928 = vmatprep.subr.bf16.mxu1 (!%p138_p2), %v1099_v3  ;;  %v913_v31 = vpack.c.bf16 (!%p138_p2), %v539_v27, %v538_v26  ;;  %v916_v39 = vpack.c.bf16 (!%p138_p2), %v541_v35, %v540_v32  ;;  %v542_v41 = vld [vmem:[%s1427_s1 + $0x60] sm:$0xff] (!%p138_p2)  ;;  %v543_v42 = vld [vmem:[%s1427_s1 + $0x68] sm:$0xff] (!%p138_p2)  ;;  %s1106_s27 = smov (!%p138_p2), 112   ;;  %v544_v47 = vld [vmem:[%s1427_s1 + $0x70] sm:$0xff] (!%p138_p2)  ;;  %vm503_vm4 = vcmask (!%p138_p2), 654336   ;;  %vm512_vm5 = vcmask (!%p138_p2), 785408  }
   0xa   : > { %v919_v46 = vpack.c.bf16 (!%p138_p2), %v543_v42, %v542_v41  ;;  %v545_v48 = vld [vmem:[%s1427_s1 + $0x78] sm:$0xff] (!%p138_p2)  ;;  %v546_v53 = vld [vmem:[%s1427_s1 + $0x80] sm:$0xff] (!%p138_p2)  ;;  %v547_v54 = vld [vmem:[%s1427_s1 + $0x88] sm:$0xff] (!%p138_p2)  ;;  %vm521_vm6 = vcmask (!%p138_p2), 916480  }
   0xb   : > { %v922_v52 = vpack.c.bf16 (!%p138_p2), %v545_v48, %v544_v47  ;;  %v925_v58 = vpack.c.bf16 (!%p138_p2), %v547_v54, %v546_v53 }
   0xc   : > { %905 = vmatpush1.bf16.msra.mxu0 (!%p138_p2), %v904_v6  ;;  %937 = vmatpush1.bf16.msra.mxu1 (!%p138_p2), %v904_v6 }
   0xd   : > { %s1431_s13 = smov (!%p160_p3, %s834_s13), 1  ;;  %906 = vmatprep.subr.bf16.mxu0 %v1099_v3  ;;  %929 = vmatprep.subr.bf16.mxu1 %v1099_v3 }
   0xe   : > { %s945_s22 = smul.u32 160, %s1431_s13 }
  0x10   : > { %s1167_s29 = scalar_lea.vmem %s1426_s0, %s945_s22  ;;  %908 = vmatpush1.bf16.msra.mxu0 %v907_v14  ;;  %938 = vmatpush1.bf16.msra.mxu1 %v907_v14  ;;  %s1105_s22 = smov 80  }
  0x11   : > { %v1176_v11 = vld [vmem:[%s1167_s29 + $0x10] sm:$0xff]  ;;  %v1179_v12 = vld [vmem:[%s1167_s29 + $0x20] sm:$0xff]  ;;  %909 = vmatprep.subr.bf16.mxu0 %v1099_v3  ;;  %930 = vmatprep.subr.bf16.mxu1 %v1099_v3 }
  0x12   : > { %v177_v13 = vld [vmem:[%s1167_s29 + $0x1] sm:$0xff]  ;;  %v976_v15 = vpack.i.bf16 %v1179_v12, %v1176_v11  ;;  %v178_v16 = vld [vmem:[%s1167_s29 + $0x11] sm:$0xff] }
  0x13   : > { %v850_v17 = vld [vmem:[%s1167_s29 + $0x21] sm:$0xff]  ;;  %v966_v19 = vpack.i.bf16 %v178_v16, %v177_v13  ;;  %v186_v20 = vld [vmem:[%s1167_s29 + $0x12] sm:$0xff] }
  0x14   : > { %v185_v18 = vld [vmem:[%s1167_s29 + $0x2] sm:$0xff]  ;;  %977 = vrot.lane.b32.xlu1 %v976_v15, %s1100_s7  ;;  %v981_v22 = vpack.i.bf16 %v850_v17, %v178_v16  ;;  %v1198_v24 = vld [vmem:[%s1167_s29 + $0x30] sm:$0xff]  ;;  %911 = vmatpush1.bf16.msra.mxu0 %v910_v25 }
  0x15   : > { %v1191_v21 = vld [vmem:[%s1167_s29 + $0x22] sm:$0xff]  ;;  %967 = vrot.lane.b32.xlu0 %v966_v19, %s1101_s8  ;;  %v971_v23 = vpack.i.bf16 %v186_v20, %v185_v18  ;;  %v991_v28 = vpack.i.bf16 %v1198_v24, %v1179_v12  ;;  %v874_v33 = vld [vmem:[%s1167_s29 + $0x31] sm:$0xff]  ;;  %912 = vmatprep.subr.bf16.mxu0 %v1099_v3 }
  0x16   : > { %890 = vmatprep.mubr.msk.f32.mxu0 %vm467_vm0, %v1191_v21  ;;  %v986_v29 = vpack.i.bf16 %v1191_v21, %v186_v20  ;;  %v1214_v30 = vld [vmem:[%s1167_s29 + $0x41] sm:$0xff]  ;;  %939 = vmatpush1.bf16.msra.mxu1 %v910_v25  ;;  %v996_v37 = vpack.i.bf16 %v874_v33, %v850_v17  ;;  %v1234_v38 = vld [vmem:[%s1167_s29 + $0x50] sm:$0xff] }
  0x17   : > { %v1221_v34 = vld [vmem:[%s1167_s29 + $0x62] sm:$0xff]  ;;  %931 = vmatprep.subr.bf16.mxu1 %v1099_v3  ;;  %v1001_v36 = vpack.i.bf16 %v1214_v30, %v850_v17  ;;  %v1011_v43 = vpack.i.bf16 %v1234_v38, %v1198_v24  ;;  %v182_v45 = vld [vmem:[%s1167_s29 + $0x51] sm:$0xff] }
  0x18   : > { %982 = vrot.lane.b32.xlu1 %v981_v22, %s1102_s15  ;;  %894 = vmatprep.mubr.msk.f32.mxu1 %vm467_vm0, %v1221_v34  ;;  %v1237_v40 = vld [vmem:[%s1167_s29 + $0x42] sm:$0xff]  ;;  %v1021_v49 = vpack.i.bf16 %v182_v45, %v874_v33  ;;  %v1265_v50 = vld [vmem:[%s1167_s29 + $0x32] sm:$0xff] }
  0x19   : > { %972 = vrot.lane.b32.xlu0 %v971_v23, %s1103_s16  ;;  %914 = vmatpush1.bf16.msra.mxu0 %v913_v31  ;;  %v1006_v44 = vpack.i.bf16 %v1237_v40, %v1191_v21  ;;  %v1268_v51 = vld [vmem:[%s1167_s29 + $0x52] sm:$0xff]  ;;  %v1283_v56 = vld [vmem:[%s1167_s29 + $0x40] sm:$0xff]  ;;  %v1061_v63 = vpack.i.bf16 %v1221_v34, %v1237_v40 }
  0x1a   : > { %915 = vmatprep.subr.bf16.mxu0 %v1099_v3  ;;  %940 = vmatpush1.bf16.msra.mxu1 %v913_v31  ;;  %v1031_v55 = vpack.i.bf16 %v1268_v51, %v1265_v50  ;;  %v1286_v57 = vld [vmem:[%s1167_s29 + $0x60] sm:$0xff]  ;;  %v184_v62 = vld [vmem:[%s1167_s29 + $0x71] sm:$0xff] }
  0x1b   : > { %932 = vmatprep.subr.bf16.mxu1 %v1099_v3  ;;  %v1041_v59 = vpack.i.bf16 %v1286_v57, %v1283_v56  ;;  %v854_v60 = vld [vmem:[%s1167_s29 + $0x61] sm:$0xff]  ;;  %v1304_v1 = vld [vmem:[%s1167_s29 + $0x70] sm:$0xff]  ;;  %v1081_v6 = vpack.i.bf16 %v184_v62, %v182_v45 }
  0x1c   : > { %992 = vrot.lane.b32.xlu1 %v991_v28, %s1104_s21  ;;  %v1051_v61 = vpack.i.bf16 %v854_v60, %v1214_v30  ;;  %v1056_v0 = vpack.i.bf16 %v184_v62, %v854_v60  ;;  %v1307_v2 = vld [vmem:[%s1167_s29 + $0x72] sm:$0xff]  ;;  %v848_v5 = vld [vmem:[%s1167_s29 + $0x80] sm:$0xff] }
  0x1d   : > { %987 = vrot.lane.b32.xlu0 %v986_v29, %s1105_s22  ;;  %917 = vmatpush1.bf16.msra.mxu0 %v916_v39  ;;  %v1066_v4 = vpack.i.bf16 %v1307_v2, %v1221_v34  ;;  %v1076_v7 = vpack.i.bf16 %v848_v5, %v1304_v1  ;;  %v856_v8 = vld [vmem:[%s1167_s29 + $0x81] sm:$0xff]  ;;  %v872_v10 = vld [vmem:[%s1167_s29 + $0x90] sm:$0xff] }
  0x1e   : > { %918 = vmatprep.subr.bf16.mxu0 %v1099_v3  ;;  %941 = vmatpush1.bf16.msra.mxu1 %v916_v39  ;;  %v1086_v9 = vpack.i.bf16 %v856_v8, %v184_v62  ;;  %v1329_v13 = vld [vmem:[%s1167_s29 + $0x82] sm:$0xff]  ;;  %v880_v14 = vld [vmem:[%s1167_s29 + $0x91] sm:$0xff] }
  0x1f   : > { %933 = vmatprep.subr.bf16.mxu1 %v1099_v3  ;;  %v169_v19 = vld [vmem:[%s1167_s29] sm:$0xff] }
  0x20   : > { %1002 = vrot.lane.b32.xlu1 %v1001_v36, %s1101_s8 }
  0x21   : > { %997 = vrot.lane.b32.xlu0 %v996_v37, %s1106_s27  ;;  %920 = vmatpush1.bf16.msra.mxu0 %v919_v46 }
  0x22   : > { %921 = vmatprep.subr.bf16.mxu0 %v1099_v3  ;;  %942 = vmatpush1.bf16.msra.mxu1 %v919_v46 }
  0x23   : > { %934 = vmatprep.subr.bf16.mxu1 %v1099_v3 }
  0x24   : > { %1012 = vrot.lane.b32.xlu1 %v1011_v43, %s1100_s7 }
  0x25   : > { %1007 = vrot.lane.b32.xlu0 %v1006_v44, %s1103_s16  ;;  %923 = vmatpush1.bf16.msra.mxu0 %v922_v52 }
  0x26   : > { %924 = vmatprep.subr.bf16.mxu0 %v1099_v3  ;;  %943 = vmatpush1.bf16.msra.mxu1 %v922_v52 }
  0x27   : > { %935 = vmatprep.subr.bf16.mxu1 %v1099_v3  ;;  %v1071_v3 = vpack.i.bf16 %v1304_v1, %v1234_v38 }
  0x28   : > { %1022 = vrot.lane.b32.xlu1 %v1021_v49, %s1101_s8 }
  0x29   : > { %1017 = vrot.lane.b32.xlu0 %v1021_v49, %s1102_s15  ;;  %926 = vmatpush1.bf16.msra.mxu0 %v925_v58 }
  0x2a   : > { %944 = vmatpush1.bf16.msra.mxu1 %v925_v58 }
  0x2c   : > { %1032 = vrot.lane.b32.xlu1 %v1031_v55, %s1103_s16 }
  0x2d   : > { %1027 = vrot.lane.b32.xlu0 %v1031_v55, %s1105_s22 }
  0x30   : > { %1042 = vrot.lane.b32.xlu1 %v1041_v59, %s1100_s7 }
  0x31   : > { %1037 = vrot.lane.b32.xlu0 %v1041_v59, %s1104_s21 }
  0x34   : > { %1052 = vrot.lane.b32.xlu1 %v1051_v61, %s1102_s15 }
  0x35   : > { %1047 = vrot.lane.b32.xlu0 %v1051_v61, %s1106_s27 }
  0x38   : > { %1062 = vrot.lane.b32.xlu1 %v1061_v63, %s1105_s22 }
  0x39   : > { %1057 = vrot.lane.b32.xlu0 %v1056_v0, %s1101_s8  ;;  %s840_s8 = sshll.u32 %s1431_s13, 1 }
  0x3a   : > { %s168_s17 = scalar_lea.vmem %s1429_s3, %s840_s8 }
  0x3c   : > { %1072 = vrot.lane.b32.xlu1 %v1071_v3, %s1104_s21 }
  0x3d   : > { %1067 = vrot.lane.b32.xlu0 %v1066_v4, %s1103_s16 }
  0x40   : > { %1082 = vrot.lane.b32.xlu1 %v1081_v6, %s1106_s27 }
  0x41   : > { %1077 = vrot.lane.b32.xlu0 %v1076_v7, %s1100_s7 }
  0x44   : > { %391 = vrot.lane.b32.xlu1 %v1307_v2, %s1105_s22 }
  0x45   : > { %1087 = vrot.lane.b32.xlu0 %v1086_v9, %s1102_s15 }
  0x48   : > { %455 = vrot.lane.b32.xlu1 %v856_v8, %s1106_s27 }
  0x49   : > { %423 = vrot.lane.b32.xlu0 %v848_v5, %s1104_s21 }
  0x4c   : > { %425 = vrot.lane.b32.xlu1 %v872_v10, %s1104_s21 }
  0x4d   : > { %393 = vrot.lane.b32.xlu0 %v1329_v13, %s1105_s22 }
  0x51   : > { %457 = vrot.lane.b32.xlu0 %v880_v14, %s1106_s27 }
  0x86   : > { %v978_v15 = vpop.permute.xlu1 %977 }
  0x87   : > { %v968_v16 = vpop.permute.xlu0 %967  ;;  %v979_v27 = vunpack.i.l.bf16 %v978_v15  ;;  %v980_v28 = vunpack.i.h.bf16 %v978_v15 }
  0x88   : > { %v970_v17 = vunpack.i.h.bf16 %v968_v16  ;;  %v969_v18 = vunpack.i.l.bf16 %v968_v16 }
  0x8a   : > { %v983_v20 = vpop.permute.xlu1 %982  ;;  %v468_v21 = vsel %vm467_vm0, %v169_v19, %v969_v18  ;;  %v469_v22 = vsel %vm467_vm0, %v1176_v11, %v970_v17 }
  0x8b   : > { %v973_v23 = vpop.permute.xlu0 %972  ;;  %v984_v29 = vunpack.i.l.bf16 %v983_v20  ;;  %v985_v37 = vunpack.i.h.bf16 %v983_v20 }
  0x8c   : > { %v975_v25 = vunpack.i.h.bf16 %v973_v23  ;;  %v974_v26 = vunpack.i.l.bf16 %v973_v23 }
  0x8e   : > { %v477_v30 = vsel %vm476_vm1, %v468_v21, %v974_v26  ;;  %v478_v31 = vsel %vm476_vm1, %v469_v22, %v975_v25  ;;  %v993_v32 = vpop.permute.xlu1 %992 }
  0x8f   : > { %v486_v33 = vsel %vm485_vm2, %v477_v30, %v979_v27  ;;  %v988_v34 = vpop.permute.xlu0 %987  ;;  %v487_v11 = vsel %vm485_vm2, %v478_v31, %v980_v28  ;;  %v994_v39 = vunpack.i.l.bf16 %v993_v32  ;;  %v995_v47 = vunpack.i.h.bf16 %v993_v32 }
  0x90   : > { %v989_v35 = vunpack.i.l.bf16 %v988_v34  ;;  %v495_v36 = vsel %vm494_vm3, %v486_v33, %v984_v29  ;;  %v990_v41 = vunpack.i.h.bf16 %v988_v34  ;;  %v496_v45 = vsel %vm494_vm3, %v487_v11, %v985_v37 }
  0x92   : > { %v1003_v42 = vpop.permute.xlu1 %1002  ;;  %v504_v43 = vsel %vm503_vm4, %v495_v36, %v989_v35  ;;  %v505_v54 = vsel %vm503_vm4, %v496_v45, %v990_v41 }
  0x93   : > { %v998_v44 = vpop.permute.xlu0 %997  ;;  %v513_v48 = vsel %vm512_vm5, %v504_v43, %v994_v39  ;;  %v514_v58 = vsel %vm512_vm5, %v505_v54, %v995_v47  ;;  %v1005_v62 = vunpack.i.h.bf16 %v1003_v42  ;;  %v1004_v63 = vunpack.i.l.bf16 %v1003_v42 }
  0x94   : > { %v999_v46 = vunpack.i.l.bf16 %v998_v44  ;;  %v1000_v49 = vunpack.i.h.bf16 %v998_v44 }
  0x95   : > { %v470_v6 = vsel %vm467_vm0, %v1179_v12, %v1004_v63 }
  0x96   : > { %v1013_v52 = vpop.permute.xlu1 %1012  ;;  %v522_v53 = vsel %vm521_vm6, %v513_v48, %v999_v46  ;;  %v523_v60 = vsel %vm521_vm6, %v514_v58, %v1000_v49 }
  0x97   : > { %v1008_v55 = vpop.permute.xlu0 %1007  ;;  %644 = vmatmul.mubr.f32.vlgmr.msra.gmra.mrb[0].mxu0 %v522_v53  ;;  %v1015_v7 = vunpack.i.h.bf16 %v1013_v52  ;;  %v1014_v8 = vunpack.i.l.bf16 %v1013_v52 }
  0x98   : > { %891 = vmatprep.mubr.msk.f32.mxu0 %vm467_vm0, %v1265_v50  ;;  %v1010_v3 = vunpack.i.h.bf16 %v1008_v55  ;;  %v1009_v4 = vunpack.i.l.bf16 %v1008_v55  ;;  %v472_v50 = vsel %vm467_vm0, %v1283_v56, %v1005_v62 }
  0x9a   : > { %v1023_v59 = vpop.permute.xlu1 %1022  ;;  %v479_v10 = vsel %vm476_vm1, %v470_v6, %v1009_v4  ;;  %v481_v14 = vsel %vm476_vm1, %v472_v50, %v1010_v3 }
  0x9b   : > { %v1018_v61 = vpop.permute.xlu0 %1017  ;;  %649 = vmatmul.mubr.f32.gmra.mrb[2].mxu0 %v523_v60  ;;  %v488_v21 = vsel %vm485_vm2, %v479_v10, %v1014_v8  ;;  %v490_v12 = vsel %vm485_vm2, %v481_v14, %v1015_v7  ;;  %v1025_v11 = vunpack.i.h.bf16 %v1023_v59  ;;  %v1024_v35 = vunpack.i.l.bf16 %v1023_v59 }
  0x9c   : > { %892 = vmatprep.mubr.msk.f32.mxu0 %vm467_vm0, %v1237_v40  ;;  %v1020_v40 = vunpack.i.h.bf16 %v1018_v61  ;;  %v1019_v15 = vunpack.i.l.bf16 %v1018_v61 }
  0x9d   : > { %v471_v46 = vsel %vm467_vm0, %v1198_v24, %v1024_v35  ;;  %v473_v47 = vsel %vm467_vm0, %v1234_v38, %v1025_v11 }
  0x9e   : > { %v1033_v0 = vpop.permute.xlu1 %1032  ;;  %v497_v56 = vsel %vm494_vm3, %v488_v21, %v1019_v15  ;;  %v499_v23 = vsel %vm494_vm3, %v490_v12, %v1020_v40 }
  0x9f   : > { %v1028_v5 = vpop.permute.xlu0 %1027  ;;  %v1035_v37 = vunpack.i.h.bf16 %v1033_v0  ;;  %v1034_v39 = vunpack.i.l.bf16 %v1033_v0 }
  0xa0   : > { %v1030_v17 = vunpack.i.h.bf16 %v1028_v5  ;;  %v1029_v18 = vunpack.i.l.bf16 %v1028_v5 }
  0xa1   : > { %v480_v53 = vsel %vm476_vm1, %v471_v46, %v1034_v39 }
  0xa2   : > { %v1043_v9 = vpop.permute.xlu1 %1042  ;;  %v506_v28 = vsel %vm503_vm4, %v497_v56, %v1029_v18  ;;  %v508_v29 = vsel %vm503_vm4, %v499_v23, %v1030_v17 }
  0xa3   : > { %v1038_v16 = vpop.permute.xlu0 %1037  ;;  %v1045_v41 = vunpack.i.h.bf16 %v1043_v9  ;;  %v1044_v42 = vunpack.i.l.bf16 %v1043_v9 }
  0xa4   : > { %v1040_v19 = vunpack.i.h.bf16 %v1038_v16  ;;  %v1039_v20 = vunpack.i.l.bf16 %v1038_v16 }
  0xa5   : > { %v489_v55 = vsel %vm485_vm2, %v480_v53, %v1044_v42 }
  0xa6   : > { %v1053_v22 = vpop.permute.xlu1 %1052  ;;  %v515_v30 = vsel %vm512_vm5, %v506_v28, %v1039_v20  ;;  %v517_v31 = vsel %vm512_vm5, %v508_v29, %v1040_v19 }
  0xa7   : > { %v1048_v25 = vpop.permute.xlu0 %1047  ;;  %v1055_v43 = vunpack.i.h.bf16 %v1053_v22  ;;  %v1054_v44 = vunpack.i.l.bf16 %v1053_v22 }
  0xa8   : > { %v1050_v26 = vunpack.i.h.bf16 %v1048_v25  ;;  %v1049_v27 = vunpack.i.l.bf16 %v1048_v25 }
  0xa9   : > { %v498_v60 = vsel %vm494_vm3, %v489_v55, %v1054_v44 }
  0xaa   : > { %v1063_v32 = vpop.permute.xlu1 %1062  ;;  %v524_v33 = vsel %vm521_vm6, %v515_v30, %v1049_v27  ;;  %v526_v34 = vsel %vm521_vm6, %v517_v31, %v1050_v26 }
  0xab   : > { %v1058_v36 = vpop.permute.xlu0 %1057  ;;  %654 = vmatmul.mubr.f32.gmra.mrb[4].mxu0 %v524_v33  ;;  %664 = vmatmul.mubr.f32.vlgmr.msra.gmra.mrb[0].mxu1 %v526_v34  ;;  %v1065_v48 = vunpack.i.h.bf16 %v1063_v32  ;;  %v1064_v49 = vunpack.i.l.bf16 %v1063_v32  ;;  %v889_v34 = vld [vmem:[%s1428_s2] ss:$0 sm:$0xff] }
  0xac   : > { %893 = vmatprep.mubr.msk.f32.mxu0 %vm467_vm0, %v1268_v51  ;;  %895 = vmatprep.mubr.msk.f32.mxu1 %vm467_vm0, %v1307_v2  ;;  %v482_v51 = vsel %vm476_vm1, %v473_v47, %v1035_v37  ;;  %v1059_v59 = vunpack.i.l.bf16 %v1058_v36  ;;  %v1060_v10 = vunpack.i.h.bf16 %v1058_v36 }
  0xad   : > { %v491_v58 = vsel %vm485_vm2, %v482_v51, %v1045_v41  ;;  %v507_v0 = vsel %vm503_vm4, %v498_v60, %v1064_v49 }
  0xae   : > { %v1073_v45 = vpop.permute.xlu1 %1072  ;;  %v500_v24 = vsel %vm494_vm3, %v491_v58, %v1055_v43  ;;  %v474_v50 = vsel %vm467_vm0, %v1286_v57, %v1059_v59  ;;  %v475_v18 = vsel %vm467_vm0, %v1304_v1, %v1060_v10 }
  0xaf   : > { %v1068_v52 = vpop.permute.xlu0 %1067  ;;  %v1075_v54 = vunpack.i.h.bf16 %v1073_v45  ;;  %v1074_v2 = vunpack.i.l.bf16 %v1073_v45  ;;  %v509_v3 = vsel %vm503_vm4, %v500_v24, %v1065_v48 }
  0xb0   : > { %v1069_v4 = vunpack.i.l.bf16 %v1068_v52  ;;  %v1070_v17 = vunpack.i.h.bf16 %v1068_v52 }
  0xb1   : > { %v516_v5 = vsel %vm512_vm5, %v507_v0, %v1074_v2  ;;  %v518_v6 = vsel %vm512_vm5, %v509_v3, %v1075_v54 }
  0xb2   : > { %v1083_v61 = vpop.permute.xlu1 %1082  ;;  %v483_v15 = vsel %vm476_vm1, %v474_v50, %v1069_v4  ;;  %v484_v25 = vsel %vm476_vm1, %v475_v18, %v1070_v17  ;;  %v1109_v18 = vmov 0.0  }
  0xb3   : > { %v1085_v38 = vunpack.i.h.bf16 %v1083_v61  ;;  %v1084_v62 = vunpack.i.l.bf16 %v1083_v61  ;;  %v1078_v63 = vpop.permute.xlu0 %1077 }
  0xb4   : > { %v1079_v7 = vunpack.i.l.bf16 %v1078_v63  ;;  %v1080_v19 = vunpack.i.h.bf16 %v1078_v63 }
  0xb5   : > { %v525_v8 = vsel %vm521_vm6, %v516_v5, %v1084_v62  ;;  %v527_v9 = vsel %vm521_vm6, %v518_v6, %v1085_v38  ;;  %v1107_v6 = vmov 1983009808  }
  0xb6   : > { %659 = vmatmul.mubr.f32.gmra.mrb[6].mxu0 %v525_v8  ;;  %669 = vmatmul.mubr.f32.gmra.mrb[2].mxu1 %v527_v9  ;;  %v392_v14 = vpop.permute.xlu1 %391  ;;  %v492_v57 = vsel %vm485_vm2, %v483_v15, %v1079_v7  ;;  %v493_v27 = vsel %vm485_vm2, %v484_v25, %v1080_v19  ;;  %v725_v50 = vunpack.c.l.s4 %v1107_v6  ;;  %v727_v7 = vlaneseq }
  0xb7   : > { %v1088_v40 = vpop.permute.xlu0 %1087  ;;  %896 = vmatprep.mubr.msk.f32.mxu1 %vm467_vm0, %v1329_v13  ;;  %v888_v13 = vld [vmem:[%s1167_s29 + $0x92] sm:$0xff]  ;;  %v1108_v8 = vmov 1934713408  }
  0xb8   : > { %v1089_v16 = vunpack.i.l.bf16 %v1088_v40  ;;  %v1090_v12 = vunpack.i.h.bf16 %v1088_v40  ;;  %v733_v9 = vunpack.c.l.s4 %v1108_v8  ;;  %v726_v10 = vunpack.c.0.s8 %v725_v50 }
  0xb9   : > { %vm778_vm7 = vcmp.lt.s32.totalorder %v727_v7, 256 }
  0xba   : > { %v501_v20 = vsel %vm494_vm3, %v492_v57, %v1089_v16  ;;  %v456_v21 = vpop.permute.xlu1 %455  ;;  %v502_v1 = vsel %vm494_vm3, %v493_v27, %v1090_v12  ;;  %v734_v40 = vunpack.c.0.s8 %v733_v9 }
  0xbb   : > { %v510_v22 = vsel %vm503_vm4, %v501_v20, %v392_v14  ;;  %v424_v56 = vpop.permute.xlu0 %423  ;;  %v728_v14 = vshrl.u32 %v727_v7, 7 }
  0xbc   : > { %v519_v23 = vsel %vm512_vm5, %v510_v22, %v424_v56  ;;  %v1110_v56 = vmov 1966171168  }
  0xbd   : > { %v528_v26 = vsel %vm521_vm6, %v519_v23, %v456_v21  ;;  %v729_v15 = vsub.s32 %v726_v10, %v728_v14  ;;  %v737_v16 = vsub.s32 %v734_v40, %v728_v14  ;;  %v762_v23 = vunpack.c.l.s4 %v1110_v56 }
  0xbe   : > { %674 = vmatmul.mubr.f32.gmra.mrb[4].mxu1 %v528_v26  ;;  %v426_v30 = vpop.permute.xlu1 %425 }
  0xbf   : > { %v394_v28 = vpop.permute.xlu0 %393  ;;  %897 = vmatprep.mubr.msk.f32.mxu1 %vm467_vm0, %v888_v13  ;;  %v763_v25 = vunpack.c.0.s8 %v762_v23 }
  0xc0   : > { %v511_v29 = vsel %vm503_vm4, %v502_v1, %v394_v28 }
  0xc1   : > { %v520_v31 = vsel %vm512_vm5, %v511_v29, %v426_v30  ;;  %v766_v26 = vsub.s32 %v763_v25, %v728_v14 }
  0xc3   : > { %v458_v32 = vpop.permute.xlu0 %457 }
  0xc4   : > { %v529_v33 = vsel %vm521_vm6, %v520_v31, %v458_v32 }
  0xc5   : > { %679 = vmatmul.mubr.f32.gmra.mrb[6].mxu1 %v529_v33 }
 0x16a   : > { %v645_v11 = vpop.f32.mrb[0].mxu0 }
 0x16b   : > { %v646_v35 = vadd.f32 %v889_v34, %v645_v11  ;;  %v647_v36 = vpop.f32.mrb[1].mxu0 }
 0x16d   : > { %v684_v37 = vmax.f32 %v646_v35, 0.0 }
 0x16e   : > { %v650_v39 = vpop.f32.mrb[2].mxu0 }
 0x16f   : > { %v651_v41 = vadd.f32 %v889_v34, %v650_v39  ;;  %v652_v42 = vpop.f32.mrb[3].mxu0  ;;  %692 = vxpose.xlu1.b32.start [1/8] (short) (narrow) %v684_v37, 8 }
 0x171   : > { %v685_v43 = vmax.f32 %v651_v41, 0.0 }
 0x173   : > { %693 = vxpose.xlu1.b32.cont [2/8] (short) (narrow) %v685_v43, 8 }
 0x17e   : > { %v655_v44 = vpop.f32.mrb[4].mxu0  ;;  %v665_v45 = vpop.f32.mrb[0].mxu1 }
 0x17f   : > { %v656_v46 = vadd.f32 %v889_v34, %v655_v44  ;;  %v657_v47 = vpop.f32.mrb[5].mxu0  ;;  %v667_v48 = vpop.f32.mrb[1].mxu1  ;;  %v666_v55 = vadd.f32 %v889_v34, %v665_v45 }
 0x181   : > { %v686_v49 = vmax.f32 %v656_v46, 0.0  ;;  %v688_v59 = vmax.f32 %v666_v55, 0.0 }
 0x183   : > { %694 = vxpose.xlu1.b32.cont [3/8] (short) (narrow) %v686_v49, 8 }
 0x189   : > { %v660_v52 = vpop.f32.mrb[6].mxu0  ;;  %v670_v53 = vpop.f32.mrb[2].mxu1 }
 0x18a   : > { %v661_v51 = vadd.f32 %v889_v34, %v660_v52  ;;  %v662_v54 = vpop.f32.mrb[7].mxu0  ;;  %v672_v2 = vpop.f32.mrb[3].mxu1  ;;  %v671_v60 = vadd.f32 %v889_v34, %v670_v53 }
 0x18c   : > { %v687_v58 = vmax.f32 %v661_v51, 0.0  ;;  %v689_v38 = vmax.f32 %v671_v60, 0.0 }
 0x18e   : > { %695 = vxpose.xlu1.b32.cont [4/8] (short) (narrow) %v687_v58, 8 }
 0x191   : > { %v675_v24 = vpop.f32.mrb[4].mxu1 }
 0x192   : > { %v677_v61 = vpop.f32.mrb[5].mxu1  ;;  %696 = vxpose.xlu1.b32.cont [5/8] (short) (narrow) %v688_v59, 8  ;;  %v676_v62 = vadd.f32 %v889_v34, %v675_v24 }
 0x194   : > { %v690_v63 = vmax.f32 %v676_v62, 0.0 }
 0x196   : > { %697 = vxpose.xlu1.b32.cont [6/8] (short) (narrow) %v689_v38, 8 }
 0x198   : > { %v680_v0 = vpop.f32.mrb[6].mxu1 }
 0x199   : > { %v681_v3 = vadd.f32 %v889_v34, %v680_v0  ;;  %v682_v4 = vpop.f32.mrb[7].mxu1 }
 0x19a   : > { %698 = vxpose.xlu1.b32.cont [7/8] (short) (narrow) %v690_v63, 8 }
 0x19b   : > { %v691_v5 = vmax.f32 %v681_v3, 0.0 }
 0x19e   : > { %699 = vxpose.xlu1.b32.end [8/8] (short) (narrow) %v691_v5, 8 }
 0x202   : > { %v708_v17 = vpop.trf.xlu1 }
 0x203   : > { %v730_v57 = vrot.slane %v708_v17, %v729_v15 }
 0x205   : > { %v731_v19 = vcombine.high %v730_v57, %v1109_v18  ;;  %v738_v20 = vrot.slane %v730_v57, %v737_v16 }
 0x207   : > { %v745_v21 = vrot.slane %v731_v19, %v737_v16  ;;  %v746_v12 = vcombine.high %v738_v20, %v1109_v18 }
 0x209   : > { %749 = vrot.lane.b32.xlu0 %v746_v12, %s1102_s15  ;;  %v747_v22 = vcombine.high %v745_v21, %v1109_v18 }
 0x20d   : > { %753 = vrot.lane.b32.xlu0 %v747_v22, %s1102_s15 }
 0x27b   : > { %v750_v13 = vpop.permute.xlu0 %749 }
 0x27c   : > { %v756_v28 = vsel %vm494_vm3, %v738_v20, %v750_v13 }
 0x27f   : > { %v754_v27 = vpop.permute.xlu0 %753 }
 0x280   : > { %v757_v1 = vsel %vm494_vm3, %v745_v21, %v754_v27 }
 0x281   : > { %v760_v29 = vcombine.low %v756_v28, %v757_v1 }
 0x283   : > { %v767_v30 = vrot.slane %v760_v29, %v766_v26 }
 0x285   : > { %v774_v31 = vrot.slane %v767_v30, %v766_v26 }
 0x287   : > { %780 = vst.msk [vmem:[%s168_s17] sm:$0x3] %vm778_vm7, %v774_v31 }
 0x288 PF: > { %s13_s12 = sadd.s32 1, %s1097_s12  }
 0x289   : > { %p10_p4 = scmp.ge.s32.totalorder %s13_s12, 4  }
 0x28b   :  { %12 = sbr.rel (!%p10_p4) target bundleno = 1 (0x1), region = 64 }

</bundles_post_ra>
